<compile_context>
chip_gen: v7x
topology: tpu7x:2x2x1
jax: 0.10.0
libtpu: 0.0.40
codegen_flags: <defaults>
</compile_context>

<pallas_src>
import functools

import jax
import jax.numpy as jnp
import numpy as np
from jax.experimental import pallas as pl
from jax.experimental.pallas import tpu as pltpu

EPS = 1e-6


# ---------------------------------------------------------------------------
# Fused kernel
# ---------------------------------------------------------------------------
def _diff_loss_kernel(x1_ref, x2_ref, o_ref, *, inv_ff2):
    x1 = x1_ref[...]                       # (B, F) float32, VMEM-resident
    x2 = x2_ref[...]

    # sigmoid(x) = 1 / (1 + exp(-x)); exp rides the EUP slot, exact divide
    # keeps full f32 precision for the stage whose error is most amplified
    # by the later mean-centering.  (Overflow of exp(-x) for very negative x
    # gracefully yields 0, i.e. the correct sigmoid limit.)
    s1 = 1.0 / (1.0 + jnp.exp(-x1))
    s2 = 1.0 / (1.0 + jnp.exp(-x2))

    # Center across the batch (sublane) axis.
    c1 = s1 - jnp.mean(s1, axis=0, keepdims=True)
    c2 = s2 - jnp.mean(s2, axis=0, keepdims=True)

    # Per-row L2 normalisation; torch adds eps OUTSIDE the sqrt.
    n1 = jnp.sqrt(jnp.sum(c1 * c1, axis=1, keepdims=True))   # (B, 1)
    n2 = jnp.sqrt(jnp.sum(c2 * c2, axis=1, keepdims=True))
    a = c1 * pl.reciprocal(n1 + EPS, approx=True)             # EUP, ~free
    b = c2 * pl.reciprocal(n2 + EPS, approx=True)

    # (B, B) Gram matrices, contracting the feature (lane) axis on the MXU.
    dn = (((1,), (1,)), ((), ()))          # contract dim 1 of both operands
    g1 = jax.lax.dot_general(a, a, dn, preferred_element_type=jnp.float32)
    g2 = jax.lax.dot_general(b, b, dn, preferred_element_type=jnp.float32)

    # mean((a^T b)^2) over the F*F matrix  ==  sum(g1 * g2) / F^2.
    o_ref[0, 0] = jnp.sum(g1 * g2) * inv_ff2


def diff_loss(input1, input2):
    bsz = input1.shape[0]
    x1 = input1.reshape(bsz, -1).astype(jnp.float32)
    x2 = input2.reshape(bsz, -1).astype(jnp.float32)
    f = x1.shape[1]

    cost = pl.CostEstimate(
        flops=4 * bsz * bsz * f + 16 * bsz * f,    # two Gram matmuls + elementwise
        transcendentals=2 * bsz * f,               # exp for the sigmoids
        bytes_accessed=2 * bsz * f * 4 + 4,
    )

    out = pl.pallas_call(
        functools.partial(_diff_loss_kernel,
                          inv_ff2=1.0 / (float(f) * float(f))),
        out_shape=jax.ShapeDtypeStruct((1, 1), jnp.float32),
        in_specs=[
            pl.BlockSpec(memory_space=pltpu.MemorySpace.VMEM),  # whole array in VMEM
            pl.BlockSpec(memory_space=pltpu.MemorySpace.VMEM),
        ],
        out_specs=pl.BlockSpec(memory_space=pltpu.MemorySpace.SMEM),  # scalar result
        cost_estimate=cost,
    )(x1, x2)
    return out[0, 0]


# ---------------------------------------------------------------------------
# Pure-JAX reference (literal translation of the torch forward, incl. (F,F) mm)
# ---------------------------------------------------------------------------
def _ref_diff_loss(input1, input2):
    bsz = input1.shape[0]
    x1 = jax.nn.sigmoid(input1).reshape(bsz, -1)
    x2 = jax.nn.sigmoid(input2).reshape(bsz, -1)
    x1 = x1 - jnp.mean(x1, axis=0, keepdims=True)
    x2 = x2 - jnp.mean(x2, axis=0, keepdims=True)
    n1 = jnp.sqrt(jnp.sum(x1 * x1, axis=1, keepdims=True))
    n2 = jnp.sqrt(jnp.sum(x2 * x2, axis=1, keepdims=True))
    x1 = x1 / (n1 + EPS)
    x2 = x2 / (n2 + EPS)
    m = x1.T @ x2                                  # the literal (F, F) matrix
    return jnp.mean(m * m)


if __name__ == "__main__":
    B, C, H, W = 4, 4, 16, 16                      # flattened feature size F = 1024
    key = jax.random.PRNGKey(0)
    k1, k2 = jax.random.split(key)
    input1 = jax.random.normal(k1, (B, C, H, W), jnp.float32)
    input2 = jax.random.normal(k2, (B, C, H, W), jnp.float32)

    loss = jax.block_until_ready(jax.jit(diff_loss)(input1, input2))
    ref = jax.block_until_ready(_ref_diff_loss(input1, input2))

    np.testing.assert_allclose(np.asarray(loss), np.asarray(ref),
                               rtol=2e-2, atol=1e-9)
    print("KERNEL_OK")
</pallas_src>

<mosaic_0001>
module attributes {stable_mosaic.version = 11 : i64} {
  func.func @_diff_loss_kernel(%arg0: memref<4x1024xf32, #tpu.memory_space<vmem>>, %arg1: memref<4x1024xf32, #tpu.memory_space<vmem>>, %arg2: memref<1x1xf32, #tpu.memory_space<smem>>) attributes {dimension_semantics = [], scalar_prefetch = 0 : i64, scratch_operands = 0 : i64, tpu.core_type = #tpu.core_type<tc>} {
    %c0 = arith.constant 0 : index
    %c0_0 = arith.constant 0 : index
    %0 = vector.load %arg0[%c0, %c0_0] : memref<4x1024xf32, #tpu.memory_space<vmem>>, vector<4x1024xf32>
    %c0_1 = arith.constant 0 : index
    %c0_2 = arith.constant 0 : index
    %1 = vector.load %arg1[%c0_1, %c0_2] : memref<4x1024xf32, #tpu.memory_space<vmem>>, vector<4x1024xf32>
    %cst = arith.constant 0.000000e+00 : f32
    %2 = vector.broadcast %cst : f32 to vector<4x1024xf32>
    %3 = arith.subf %2, %0 : vector<4x1024xf32>
    %4 = math.exp %3 : vector<4x1024xf32>
    %cst_3 = arith.constant 1.000000e+00 : f32
    %5 = vector.broadcast %cst_3 : f32 to vector<4x1024xf32>
    %6 = arith.addf %5, %4 : vector<4x1024xf32>
    %cst_4 = arith.constant 1.000000e+00 : f32
    %7 = vector.broadcast %cst_4 : f32 to vector<4x1024xf32>
    %8 = arith.divf %7, %6 : vector<4x1024xf32>
    %cst_5 = arith.constant 0.000000e+00 : f32
    %9 = vector.broadcast %cst_5 : f32 to vector<4x1024xf32>
    %10 = arith.subf %9, %1 : vector<4x1024xf32>
    %11 = math.exp %10 : vector<4x1024xf32>
    %cst_6 = arith.constant 1.000000e+00 : f32
    %12 = vector.broadcast %cst_6 : f32 to vector<4x1024xf32>
    %13 = arith.addf %12, %11 : vector<4x1024xf32>
    %cst_7 = arith.constant 1.000000e+00 : f32
    %14 = vector.broadcast %cst_7 : f32 to vector<4x1024xf32>
    %15 = arith.divf %14, %13 : vector<4x1024xf32>
    %cst_8 = arith.constant dense<0.000000e+00> : vector<1024xf32>
    %16 = vector.multi_reduction <add>, %8, %cst_8 [0] : vector<4x1024xf32> to vector<1024xf32>
    %17 = vector.shape_cast %16 : vector<1024xf32> to vector<1x1024xf32>
    %cst_9 = arith.constant 4.000000e+00 : f32
    %18 = vector.broadcast %cst_9 : f32 to vector<1x1024xf32>
    %19 = arith.divf %17, %18 : vector<1x1024xf32>
    %20 = vector.broadcast %19 : vector<1x1024xf32> to vector<4x1024xf32>
    %21 = arith.subf %8, %20 : vector<4x1024xf32>
    %cst_10 = arith.constant dense<0.000000e+00> : vector<1024xf32>
    %22 = vector.multi_reduction <add>, %15, %cst_10 [0] : vector<4x1024xf32> to vector<1024xf32>
    %23 = vector.shape_cast %22 : vector<1024xf32> to vector<1x1024xf32>
    %cst_11 = arith.constant 4.000000e+00 : f32
    %24 = vector.broadcast %cst_11 : f32 to vector<1x1024xf32>
    %25 = arith.divf %23, %24 : vector<1x1024xf32>
    %26 = vector.broadcast %25 : vector<1x1024xf32> to vector<4x1024xf32>
    %27 = arith.subf %15, %26 : vector<4x1024xf32>
    %28 = arith.mulf %21, %21 : vector<4x1024xf32>
    %cst_12 = arith.constant dense<0.000000e+00> : vector<4xf32>
    %29 = vector.multi_reduction <add>, %28, %cst_12 [1] : vector<4x1024xf32> to vector<4xf32>
    %30 = vector.shape_cast %29 : vector<4xf32> to vector<4x1xf32>
    %31 = math.sqrt %30 : vector<4x1xf32>
    %32 = arith.mulf %27, %27 : vector<4x1024xf32>
    %cst_13 = arith.constant dense<0.000000e+00> : vector<4xf32>
    %33 = vector.multi_reduction <add>, %32, %cst_13 [1] : vector<4x1024xf32> to vector<4xf32>
    %34 = vector.shape_cast %33 : vector<4xf32> to vector<4x1xf32>
    %35 = math.sqrt %34 : vector<4x1xf32>
    %cst_14 = arith.constant 9.99999997E-7 : f32
    %36 = vector.broadcast %cst_14 : f32 to vector<4x1xf32>
    %37 = arith.addf %31, %36 : vector<4x1xf32>
    %38 = tpu.reciprocal %37 {approx = true} : vector<4x1xf32> -> vector<4x1xf32>
    %39 = vector.broadcast %38 : vector<4x1xf32> to vector<4x1024xf32>
    %40 = arith.mulf %21, %39 : vector<4x1024xf32>
    %cst_15 = arith.constant 9.99999997E-7 : f32
    %41 = vector.broadcast %cst_15 : f32 to vector<4x1xf32>
    %42 = arith.addf %35, %41 : vector<4x1xf32>
    %43 = tpu.reciprocal %42 {approx = true} : vector<4x1xf32> -> vector<4x1xf32>
    %44 = vector.broadcast %43 : vector<4x1xf32> to vector<4x1024xf32>
    %45 = arith.mulf %27, %44 : vector<4x1024xf32>
    %cst_16 = arith.constant dense<0.000000e+00> : vector<4x4xf32>
    %46 = tpu.matmul %40, %40, %cst_16 {dimension_numbers = #tpu.dot_dimension_numbers<[1], [1], [0], [0], [0, 0, 1, 0], [], []>} : vector<4x1024xf32>, vector<4x1024xf32>, vector<4x4xf32> -> vector<4x4xf32>
    %cst_17 = arith.constant dense<0.000000e+00> : vector<4x4xf32>
    %47 = tpu.matmul %45, %45, %cst_17 {dimension_numbers = #tpu.dot_dimension_numbers<[1], [1], [0], [0], [0, 0, 1, 0], [], []>} : vector<4x1024xf32>, vector<4x1024xf32>, vector<4x4xf32> -> vector<4x4xf32>
    %48 = arith.mulf %46, %47 : vector<4x4xf32>
    %49 = vector.shape_cast %48 : vector<4x4xf32> to vector<1x4x4xf32>
    %cst_18 = arith.constant dense<0.000000e+00> : vector<1xf32>
    %50 = vector.multi_reduction <add>, %49, %cst_18 [1, 2] : vector<1x4x4xf32> to vector<1xf32>
    %51 = vector.shape_cast %50 : vector<1xf32> to vector<1x1x1xf32>
    %52 = vector.extract %51[0, 0, 0] : f32 from vector<1x1x1xf32>
    %cst_19 = arith.constant 9.53674316E-7 : f32
    %53 = arith.mulf %52, %cst_19 : f32
    %c0_20 = arith.constant 0 : index
    %c0_21 = arith.constant 0 : index
    %54 = memref.load %arg2[%c0_20, %c0_21] : memref<1x1xf32, #tpu.memory_space<smem>>
    memref.store %53, %arg2[%c0_20, %c0_21] : memref<1x1xf32, #tpu.memory_space<smem>>
    return
  }
}

</mosaic_0001>

<bundles_post_ra>
// kernel: diff_loss.1
= control target key start
LH: loop header
LB: loop body
LE: loop exit
PB: predicated region body
PF: predicated region fallthrough
CT: control target
= control target key end

     0   :  { %s1225_s0 = inlined_call_operand.vmem [shape: f32[4,1024], index: 0, kind: input, shape index: {}]   ;;  %s1226_s1 = inlined_call_operand.vmem [shape: f32[4,1024], index: 1, kind: input, shape index: {}]   ;;  %s1227_s2 = inlined_call_operand.hbm [shape: f32[1,1], index: 2, kind: output, shape index: {}]  }
   0x1   :  { %v12_v0 = vld [vmem:[%s1225_s0] sm:$0xff]  ;;  %v13_v1 = vld [vmem:[%s1225_s0 + $0x8] sm:$0xff]  ;;  %v14_v2 = vld [vmem:[%s1225_s0 + $0x10] sm:$0xff] }
   0x2   :  { %v15_v3 = vld [vmem:[%s1225_s0 + $0x18] sm:$0xff]  ;;  %v20_v4 = vsub.f32 0.0, %v12_v0  ;;  %v21_v5 = vsub.f32 0.0, %v13_v1  ;;  %v22_v6 = vsub.f32 0.0, %v14_v2  ;;  %v16_v7 = vld [vmem:[%s1226_s1] sm:$0xff]  ;;  %v17_v8 = vld [vmem:[%s1226_s1 + $0x8] sm:$0xff] }
   0x3   :  { %v23_v9 = vsub.f32 0.0, %v15_v3  ;;  %v18_v10 = vld [vmem:[%s1226_s1 + $0x10] sm:$0xff]  ;;  %v19_v11 = vld [vmem:[%s1226_s1 + $0x18] sm:$0xff]  ;;  %v44_v12 = vsub.f32 0.0, %v16_v7  ;;  %v45_v13 = vsub.f32 0.0, %v17_v8 }
   0x4   :  { %v24_v14 = vmul.f32 1.442695, %v20_v4  ;;  %v26_v15 = vmul.f32 1.442695, %v21_v5  ;;  %v28_v16 = vmul.f32 1.442695, %v22_v6 }
   0x5   :  { %v30_v17 = vmul.f32 1.442695, %v23_v9  ;;  %v46_v18 = vsub.f32 0.0, %v18_v10  ;;  %v47_v19 = vsub.f32 0.0, %v19_v11 }
   0x6   :  { %1000 = vpow2.f32 %v24_v14 }
   0x7   :  { %7 = vsyncpa [#allocation3], 0  ;;  %1002 = vpow2.f32 %v26_v15  ;;  %v48_v20 = vmul.f32 1.442695, %v44_v12  ;;  %v50_v21 = vmul.f32 1.442695, %v45_v13 }
   0x8   :  { %1004 = vpow2.f32 %v28_v16  ;;  %v52_v22 = vmul.f32 1.442695, %v46_v18  ;;  %v54_v23 = vmul.f32 1.442695, %v47_v19  ;;  %vm80_vm0 = vcmask 1043456   ;;  %s1040_s27 = scalar_lea.hbm %s1227_s2, 16 }
   0x9   :  { %1006 = vpow2.f32 %v30_v17  ;;  %vm957_vm5 = vcmask 27648   ;;  %p1041_p0 = scmp.ne.s32.totalorder %s1227_s2, %s1040_s27  ;;  %p1044_p1 = scmp.lt.u32.totalorder %s1040_s27, %s1227_s2 }
   0xa   :  { %1008 = vpow2.f32 %v48_v20 }
   0xb   :  { %1010 = vpow2.f32 %v50_v21  ;;  %p1046_p2 = pnand %p1044_p1, %p1041_p0 }
   0xc   :  { %1012 = vpow2.f32 %v52_v22 }
   0xd   :  { %1014 = vpow2.f32 %v54_v23 }
  0x10   :  { %v1001_v24 = vpop.eup %1000 }
  0x11   :  { %v1003_v25 = vpop.eup %1002  ;;  %v32_v26 = vadd.f32 1.0, %v1001_v24 }
  0x12   :  { %v1005_v27 = vpop.eup %1004  ;;  %v33_v28 = vadd.f32 1.0, %v1003_v25 }
  0x13   :  { %v1007_v29 = vpop.eup %1006  ;;  %v34_v30 = vadd.f32 1.0, %v1005_v27  ;;  %1016 = vrcp.f32 %v32_v26 }
  0x14   :  { %v35_v31 = vadd.f32 1.0, %v1007_v29  ;;  %1018 = vrcp.f32 %v33_v28  ;;  %v1009_v32 = vpop.eup %1008 }
  0x15   :  { %1020 = vrcp.f32 %v34_v30  ;;  %v1011_v33 = vpop.eup %1010  ;;  %v56_v36 = vadd.f32 1.0, %v1009_v32 }
  0x16   :  { %1022 = vrcp.f32 %v35_v31  ;;  %v1013_v34 = vpop.eup %1012  ;;  %v57_v37 = vadd.f32 1.0, %v1011_v33 }
  0x17   :  { %v1015_v35 = vpop.eup %1014  ;;  %v58_v38 = vadd.f32 1.0, %v1013_v34  ;;  %1024 = vrcp.f32 %v56_v36 }
  0x18   :  { %v59_v39 = vadd.f32 1.0, %v1015_v35  ;;  %1026 = vrcp.f32 %v57_v37 }
  0x19   :  { %1028 = vrcp.f32 %v58_v38 }
  0x1a   :  { %1030 = vrcp.f32 %v59_v39 }
  0x1d   :  { %v1093_v40 = vpop.eup %1016 }
  0x1e   :  { %v1095_v41 = vpop.eup %1018  ;;  %v72_v42 = vcombine.high %v1093_v40, %v1093_v40  ;;  %v81_v43 = vsel %vm80_vm0, %v1093_v40, 0.0 }
  0x1f   :  { %v1101_v44 = vpop.eup %1020  ;;  %v73_v45 = vcombine.high %v1095_v41, %v1095_v41  ;;  %v82_v46 = vrot.slane %v81_v43, 4  ;;  %v95_v47 = vsel %vm80_vm0, %v1095_v41, 0.0 }
  0x20   :  { %v1107_v48 = vpop.eup %1022  ;;  %v74_v49 = vcombine.high %v1101_v44, %v1101_v44  ;;  %v88_v50 = vsel %vm80_vm0, %v72_v42, 0.0  ;;  %v96_v51 = vrot.slane %v95_v47, 4  ;;  %v109_v52 = vsel %vm80_vm0, %v1101_v44, 0.0 }
  0x21   :  { %v75_v53 = vcombine.high %v1107_v48, %v1107_v48  ;;  %v83_v54 = vadd.f32 %v82_v46, %v81_v43  ;;  %v89_v55 = vrot.slane %v88_v50, 4  ;;  %v102_v56 = vsel %vm80_vm0, %v73_v45, 0.0  ;;  %v1121_v9 = vpop.eup %1024 }
  0x22   :  { %v97_v57 = vadd.f32 %v96_v51, %v95_v47  ;;  %v103_v58 = vrot.slane %v102_v56, 4  ;;  %v110_v59 = vrot.slane %v109_v52, 4  ;;  %v116_v60 = vsel %vm80_vm0, %v74_v49, 0.0  ;;  %v1123_v14 = vpop.eup %1026 }
  0x23   :  { %v84_v61 = vrot.slane %v83_v54, 2  ;;  %v90_v62 = vadd.f32 %v89_v55, %v88_v50  ;;  %v117_v63 = vrot.slane %v116_v60, 4  ;;  %v123_v0 = vsel %vm80_vm0, %v1107_v48, 0.0  ;;  %v1125_v19 = vpop.eup %1028 }
  0x24   :  { %v98_v1 = vrot.slane %v97_v57, 2  ;;  %v104_v2 = vadd.f32 %v103_v58, %v102_v56  ;;  %v111_v3 = vadd.f32 %v110_v59, %v109_v52  ;;  %v124_v4 = vrot.slane %v123_v0, 4  ;;  %v1127_v24 = vpop.eup %1030 }
  0x25   :  { %v85_v5 = vadd.f32 %v84_v61, %v83_v54  ;;  %v91_v6 = vrot.slane %v90_v62, 2  ;;  %v118_v7 = vadd.f32 %v117_v63, %v116_v60  ;;  %v130_v8 = vsel %vm80_vm0, %v75_v53, 0.0 }
  0x26   :  { %v99_v10 = vadd.f32 %v98_v1, %v97_v57  ;;  %v105_v11 = vrot.slane %v104_v2, 2  ;;  %v112_v12 = vrot.slane %v111_v3, 2  ;;  %v125_v13 = vadd.f32 %v124_v4, %v123_v0 }
  0x27   :  { %v86_v15 = vrot.slane %v85_v5, 1  ;;  %v92_v16 = vadd.f32 %v91_v6, %v90_v62  ;;  %v119_v17 = vrot.slane %v118_v7, 2  ;;  %v131_v18 = vrot.slane %v130_v8, 4 }
  0x28   :  { %v100_v20 = vrot.slane %v99_v10, 1  ;;  %v106_v21 = vadd.f32 %v105_v11, %v104_v2  ;;  %v113_v22 = vadd.f32 %v112_v12, %v111_v3  ;;  %v126_v23 = vrot.slane %v125_v13, 2 }
  0x29   :  { %v87_v25 = vadd.f32 %v86_v15, %v85_v5  ;;  %v93_v26 = vrot.slane %v92_v16, 1  ;;  %v120_v27 = vadd.f32 %v119_v17, %v118_v7  ;;  %v132_v28 = vadd.f32 %v131_v18, %v130_v8 }
  0x2a   :  { %v101_v29 = vadd.f32 %v100_v20, %v99_v10  ;;  %v107_v30 = vrot.slane %v106_v21, 1  ;;  %v114_v31 = vrot.slane %v113_v22, 1  ;;  %v127_v32 = vadd.f32 %v126_v23, %v125_v13 }
  0x2b   :  { %v94_v33 = vadd.f32 %v93_v26, %v92_v16  ;;  %v121_v34 = vrot.slane %v120_v27, 1  ;;  %v133_v35 = vrot.slane %v132_v28, 2  ;;  %v138_v36 = vmul.f32 0.25, %v87_v25 }
  0x2c   :  { %v108_v37 = vadd.f32 %v107_v30, %v106_v21  ;;  %v115_v38 = vadd.f32 %v114_v31, %v113_v22  ;;  %v128_v39 = vrot.slane %v127_v32, 1  ;;  %v140_v42 = vmul.f32 0.25, %v101_v29 }
  0x2d   :  { %v122_v43 = vadd.f32 %v121_v34, %v120_v27  ;;  %v134_v45 = vadd.f32 %v133_v35, %v132_v28  ;;  %v139_v46 = vmul.f32 0.25, %v94_v33  ;;  %v170_v47 = vcombine.high %v1121_v9, %v1121_v9 }
  0x2e   :  { %v129_v49 = vadd.f32 %v128_v39, %v127_v32  ;;  %v141_v50 = vmul.f32 0.25, %v108_v37  ;;  %v142_v51 = vmul.f32 0.25, %v115_v38  ;;  %v171_v52 = vcombine.high %v1123_v14, %v1123_v14 }
  0x2f   :  { %v135_v53 = vrot.slane %v134_v45, 1  ;;  %v143_v54 = vmul.f32 0.25, %v122_v43  ;;  %v154_v55 = vcombine.low %v138_v36, %v139_v46  ;;  %v172_v56 = vcombine.high %v1125_v19, %v1125_v19 }
  0x30   :  { %v144_v57 = vmul.f32 0.25, %v129_v49  ;;  %v155_v58 = vcombine.low %v140_v42, %v141_v50  ;;  %v173_v59 = vcombine.high %v1127_v24, %v1127_v24  ;;  %v178_v60 = vsel %vm80_vm0, %v1121_v9, 0.0 }
  0x31   :  { %v136_v61 = vadd.f32 %v135_v53, %v134_v45  ;;  %v156_v62 = vcombine.low %v142_v51, %v143_v54  ;;  %v1140_v63 = vsub.f32 %v1093_v40, %v154_v55  ;;  %v179_v0 = vrot.slane %v178_v60, 4 }
  0x32   :  { %v1143_v1 = vsub.f32 %v1095_v41, %v155_v58  ;;  %v185_v2 = vsel %vm80_vm0, %v170_v47, 0.0  ;;  %v192_v3 = vsel %vm80_vm0, %v1123_v14, 0.0  ;;  %v199_v4 = vsel %vm80_vm0, %v171_v52, 0.0 }
  0x33   :  { %v145_v5 = vmul.f32 0.25, %v136_v61  ;;  %v1150_v6 = vsub.f32 %v1101_v44, %v156_v62  ;;  %v262_v7 = vmul.f32 %v1140_v63, %v1140_v63  ;;  %v180_v40 = vadd.f32 %v179_v0, %v178_v60 }
  0x34   :  { %v263_v8 = vmul.f32 %v1143_v1, %v1143_v1  ;;  %v186_v41 = vrot.slane %v185_v2, 4  ;;  %v193_v10 = vrot.slane %v192_v3, 4  ;;  %v200_v11 = vrot.slane %v199_v4, 4 }
  0x35   :  { %v157_v12 = vcombine.low %v144_v57, %v145_v5  ;;  %v264_v13 = vmul.f32 %v1150_v6, %v1150_v6  ;;  %v270_v15 = vcombine.high %v262_v7, %v262_v7  ;;  %v278_v16 = vsel %vm80_vm0, %v262_v7, 0.0 }
  0x36   :  { %v271_v17 = vcombine.high %v263_v8, %v263_v8  ;;  %v281_v44 = vsel %vm80_vm0, %v263_v8, 0.0  ;;  %v181_v18 = vrot.slane %v180_v40, 2  ;;  %v187_v20 = vadd.f32 %v186_v41, %v185_v2 }
  0x37   :  { %v1161_v21 = vsub.f32 %v1107_v48, %v157_v12  ;;  %v272_v22 = vcombine.high %v264_v13, %v264_v13  ;;  %v279_v23 = vsel %vm80_vm0, %v270_v15, 0.0  ;;  %v285_v25 = vsel %vm80_vm0, %v264_v13, 0.0 }
  0x38   :  { %v280_v26 = vadd.f32 %v279_v23, %v278_v16  ;;  %v283_v27 = vsel %vm80_vm0, %v271_v17, 0.0  ;;  %v182_v28 = vadd.f32 %v181_v18, %v180_v40  ;;  %v188_v29 = vrot.slane %v187_v20, 2 }
  0x39   :  { %v265_v30 = vmul.f32 %v1161_v21, %v1161_v21  ;;  %v287_v31 = vsel %vm80_vm0, %v272_v22, 0.0  ;;  %v194_v32 = vadd.f32 %v193_v10, %v192_v3  ;;  %v201_v33 = vadd.f32 %v200_v11, %v199_v4 }
  0x3a   :  { %v282_v34 = vadd.f32 %v281_v44, %v280_v26  ;;  %v183_v48 = vrot.slane %v182_v28, 1  ;;  %v189_v35 = vadd.f32 %v188_v29, %v187_v20  ;;  %v206_v36 = vsel %vm80_vm0, %v1125_v19, 0.0 }
  0x3b   :  { %v273_v37 = vcombine.high %v265_v30, %v265_v30  ;;  %v289_v38 = vsel %vm80_vm0, %v265_v30, 0.0  ;;  %v195_v39 = vrot.slane %v194_v32, 2  ;;  %v202_v42 = vrot.slane %v201_v33, 2 }
  0x3c   :  { %v284_v43 = vadd.f32 %v283_v27, %v282_v34  ;;  %v184_v45 = vadd.f32 %v183_v48, %v182_v28  ;;  %v190_v46 = vrot.slane %v189_v35, 1  ;;  %v207_v47 = vrot.slane %v206_v36, 4 }
  0x3d   :  { %v291_v49 = vsel %vm80_vm0, %v273_v37, 0.0  ;;  %v196_v50 = vadd.f32 %v195_v39, %v194_v32  ;;  %v203_v51 = vadd.f32 %v202_v42, %v201_v33  ;;  %v213_v52 = vsel %vm80_vm0, %v172_v56, 0.0 }
  0x3e   :  { %v286_v53 = vadd.f32 %v285_v25, %v284_v43  ;;  %v191_v54 = vadd.f32 %v190_v46, %v189_v35  ;;  %v208_v55 = vadd.f32 %v207_v47, %v206_v36  ;;  %v214_v57 = vrot.slane %v213_v52, 4 }
  0x3f   :  { %v197_v58 = vrot.slane %v196_v50, 1  ;;  %v204_v60 = vrot.slane %v203_v51, 1  ;;  %v220_v61 = vsel %vm80_vm0, %v1127_v24, 0.0  ;;  %v227_v62 = vsel %vm80_vm0, %v173_v59, 0.0 }
  0x40   :  { %v288_v0 = vadd.f32 %v287_v31, %v286_v53  ;;  %v209_v2 = vrot.slane %v208_v55, 2  ;;  %v215_v3 = vadd.f32 %v214_v57, %v213_v52  ;;  %v221_v4 = vrot.slane %v220_v61, 4 }
  0x41   :  { %v198_v5 = vadd.f32 %v197_v58, %v196_v50  ;;  %v205_v7 = vadd.f32 %v204_v60, %v203_v51  ;;  %v228_v40 = vrot.slane %v227_v62, 4  ;;  %v234_v8 = vmul.f32 0.25, %v184_v45 }
  0x42   :  { %v290_v56 = vadd.f32 %v289_v38, %v288_v0  ;;  %v210_v41 = vadd.f32 %v209_v2, %v208_v55  ;;  %v216_v10 = vrot.slane %v215_v3, 2  ;;  %v222_v11 = vadd.f32 %v221_v4, %v220_v61 }
  0x43   :  { %v229_v12 = vadd.f32 %v228_v40, %v227_v62  ;;  %v235_v13 = vmul.f32 0.25, %v191_v54  ;;  %v236_v15 = vmul.f32 0.25, %v198_v5  ;;  %v237_v16 = vmul.f32 0.25, %v205_v7 }
  0x44   :  { %v292_v17 = vadd.f32 %v291_v49, %v290_v56  ;;  %v211_v44 = vrot.slane %v210_v41, 1  ;;  %v217_v18 = vadd.f32 %v216_v10, %v215_v3  ;;  %v223_v59 = vrot.slane %v222_v11, 2 }
  0x45   :  { %v230_v20 = vrot.slane %v229_v12, 2  ;;  %v250_v22 = vcombine.low %v234_v8, %v235_v13  ;;  %v251_v23 = vcombine.low %v236_v15, %v237_v16  ;;  %v348_v15 = vlaneseq }
  0x46   :  { %293 = vadd.xlane.f32.xlu0 %v292_v17  ;;  %v212_v25 = vadd.f32 %v211_v44, %v210_v41  ;;  %v218_v26 = vrot.slane %v217_v18, 1  ;;  %v224_v27 = vadd.f32 %v223_v59, %v222_v11 }
  0x47   :  { %v231_v28 = vadd.f32 %v230_v20, %v229_v12  ;;  %v1178_v29 = vsub.f32 %v1121_v9, %v250_v22  ;;  %v1181_v30 = vsub.f32 %v1123_v14, %v251_v23  ;;  %v1052_v12 = vmov 839922192  }
  0x48   :  { %v219_v31 = vadd.f32 %v218_v26, %v217_v18  ;;  %v225_v32 = vrot.slane %v224_v27, 1  ;;  %v238_v33 = vmul.f32 0.25, %v212_v25  ;;  %v346_v13 = vunpack.c.l.s4 %v1052_v12 }
  0x49   :  { %v232_v34 = vrot.slane %v231_v28, 1  ;;  %v302_v48 = vmul.f32 %v1178_v29, %v1178_v29  ;;  %v303_v35 = vmul.f32 %v1181_v30, %v1181_v30  ;;  %v349_v17 = vshrl.u32 %v348_v15, 7 }
  0x4a   :  { %v226_v36 = vadd.f32 %v225_v32, %v224_v27  ;;  %v239_v37 = vmul.f32 0.25, %v219_v31  ;;  %v347_v16 = vunpack.c.0.s8 %v346_v13 }
  0x4b   :  { %v233_v38 = vadd.f32 %v232_v34, %v231_v28  ;;  %v310_v39 = vcombine.high %v302_v48, %v302_v48  ;;  %v311_v42 = vcombine.high %v303_v35, %v303_v35  ;;  %v318_v9 = vsel %vm80_vm0, %v302_v48, 0.0 }
  0x4c   :  { %v240_v43 = vmul.f32 0.25, %v226_v36  ;;  %v252_v14 = vcombine.low %v238_v33, %v239_v37  ;;  %v321_v47 = vsel %vm80_vm0, %v303_v35, 0.0  ;;  %v350_v18 = vsub.s32 %v347_v16, %v349_v17 }
  0x4d   :  { %v241_v45 = vmul.f32 0.25, %v233_v38  ;;  %v319_v46 = vsel %vm80_vm0, %v310_v39, 0.0  ;;  %v323_v52 = vsel %vm80_vm0, %v311_v42, 0.0 }
  0x4e   :  { %v1191_v49 = vsub.f32 %v1125_v19, %v252_v14  ;;  %v320_v50 = vadd.f32 %v319_v46, %v318_v9 }
  0x4f   :  { %v253_v51 = vcombine.low %v240_v43, %v241_v45 }
  0x50   :  { %v304_v53 = vmul.f32 %v1191_v49, %v1191_v49  ;;  %v322_v54 = vadd.f32 %v321_v47, %v320_v50 }
  0x51   :  { %v1197_v55 = vsub.f32 %v1127_v24, %v253_v51 }
  0x52   :  { %v312_v57 = vcombine.high %v304_v53, %v304_v53  ;;  %v324_v58 = vadd.f32 %v323_v52, %v322_v54  ;;  %v325_v60 = vsel %vm80_vm0, %v304_v53, 0.0 }
  0x53   :  { %v305_v61 = vmul.f32 %v1197_v55, %v1197_v55 }
  0x54   :  { %v326_v19 = vadd.f32 %v325_v60, %v324_v58  ;;  %v327_v62 = vsel %vm80_vm0, %v312_v57, 0.0 }
  0x55   :  { %v313_v0 = vcombine.high %v305_v61, %v305_v61  ;;  %v329_v2 = vsel %vm80_vm0, %v305_v61, 0.0 }
  0x56   :  { %v328_v3 = vadd.f32 %v327_v62, %v326_v19 }
  0x57   :  { %v331_v4 = vsel %vm80_vm0, %v313_v0, 0.0 }
  0x58   :  { %v330_v5 = vadd.f32 %v329_v2, %v328_v3 }
  0x5a   :  { %v332_v7 = vadd.f32 %v331_v4, %v330_v5 }
  0x5c   :  { %333 = vadd.xlane.f32.xlu0 %v332_v7 }
  0xd3   :  { %v294_v24 = vpop.xlane.xlu0 %293 }
  0xd4   :  { %1032 = vrsqrt.f32 %v294_v24  ;;  %vm297_vm1 = vcmp.eq.f32.partialorder %v294_v24, inf  ;;  %v300_v56 = vand.u32 2147483648, %v294_v24  ;;  %vm299_vm2 = vcmp.eq.f32.partialorder %v294_v24, 0.0 }
  0xde   :  { %v1033_v40 = vpop.eup %1032 }
  0xdf   :  { %v296_v8 = vmul.f32 %v1033_v40, %v294_v24 }
  0xe1   :  { %v298_v41 = vsel %vm297_vm1, %v294_v24, %v296_v8 }
  0xe2   :  { %v301_v10 = vsel %vm299_vm2, %v300_v56, %v298_v41 }
  0xe3   :  { %v342_v11 = vadd.f32 1e-06, %v301_v10 }
  0xe5   :  { %1034 = vrcp.f32 %v342_v11 }
  0xe9   :  { %v334_v44 = vpop.xlane.xlu0 %333 }
  0xea   :  { %1036 = vrsqrt.f32 %v334_v44  ;;  %vm337_vm3 = vcmp.eq.f32.partialorder %v334_v44, inf  ;;  %v340_v28 = vand.u32 2147483648, %v334_v44  ;;  %vm339_vm4 = vcmp.eq.f32.partialorder %v334_v44, 0.0 }
  0xef   :  { %v1035_v59 = vpop.eup %1034 }
  0xf0   :  { %v351_v20 = vrot.slane %v1035_v59, %v350_v18 }
  0xf2   :  { %v353_v22 = vmul.f32 %v351_v20, %v1140_v63  ;;  %v354_v23 = vmul.f32 %v351_v20, %v1143_v1  ;;  %v355_v32 = vmul.f32 %v351_v20, %v1150_v6  ;;  %v356_v1 = vmul.f32 %v351_v20, %v1161_v21 }
  0xf4   :  { %v1037_v25 = vpop.eup %1036  ;;  %v376_v26 = vcombine.high %v353_v22, %v353_v22  ;;  %v377_v31 = vcombine.high %v354_v23, %v354_v23  ;;  %v378_v63 = vcombine.high %v355_v32, %v355_v32  ;;  %v379_v35 = vcombine.high %v356_v1, %v356_v1 }
  0xf5   :  { %v336_v27 = vmul.f32 %v1037_v25, %v334_v44 }
  0xf6   :  { %384 = vmatprep.subr.mxu0 %v376_v26  ;;  %448 = vmatprep.mubr.f32.mxu0 %v376_v26 }
  0xf7   :  { %v338_v33 = vsel %vm337_vm3, %v334_v44, %v336_v27  ;;  %385 = vmatpush1.xpose.msra.mxu0 %v353_v22 }
  0xf8   :  { %v341_v34 = vsel %vm339_vm4, %v340_v28, %v338_v33  ;;  %454 = vmatprep.subr.mxu0 %v377_v31 }
  0xf9   :  { %v357_v48 = vadd.f32 1e-06, %v341_v34 }
  0xfa   :  { %449 = vmatmul.mubr.f32.vlgmr.msra.gmra.mrb[0].mxu0 %v353_v22 }
  0xfb   :  { %1038 = vrcp.f32 %v357_v48  ;;  %455 = vmatpush1.xpose.msra.mxu0 %v354_v23  ;;  %518 = vmatprep.mubr.f32.mxu0 %v377_v31 }
  0xfc   :  { %524 = vmatprep.subr.mxu0 %v378_v63 }
 0x102   :  { %519 = vmatmul.mubr.f32.vlgmr.msra.gmra.mrb[0].mxu0 %v354_v23 }
 0x103   :  { %525 = vmatpush1.xpose.msra.mxu0 %v355_v32  ;;  %588 = vmatprep.mubr.f32.mxu0 %v378_v63 }
 0x104   :  { %594 = vmatprep.subr.mxu0 %v379_v35 }
 0x105   :  { %v1039_v6 = vpop.eup %1038 }
 0x106   :  { %v366_v36 = vrot.slane %v1039_v6, %v350_v18 }
 0x108   :  { %v368_v37 = vmul.f32 %v366_v36, %v1178_v29  ;;  %v369_v38 = vmul.f32 %v366_v36, %v1181_v30  ;;  %v370_v21 = vmul.f32 %v366_v36, %v1191_v49  ;;  %v371_v29 = vmul.f32 %v366_v36, %v1197_v55 }
 0x10a   :  { %v668_v39 = vcombine.high %v368_v37, %v368_v37  ;;  %589 = vmatmul.mubr.f32.vlgmr.msra.gmra.mrb[0].mxu0 %v355_v32  ;;  %v669_v42 = vcombine.high %v369_v38, %v369_v38  ;;  %v670_v9 = vcombine.high %v370_v21, %v370_v21  ;;  %v671_v30 = vcombine.high %v371_v29, %v371_v29 }
 0x10b   :  { %595 = vmatpush1.xpose.msra.mxu0 %v356_v1  ;;  %658 = vmatprep.mubr.f32.mxu0 %v379_v35 }
 0x10c   :  { %676 = vmatprep.subr.mxu1 %v668_v39  ;;  %740 = vmatprep.mubr.f32.mxu1 %v668_v39 }
 0x10d   :  { %677 = vmatpush1.xpose.msra.mxu1 %v368_v37 }
 0x10e   :  { %746 = vmatprep.subr.mxu1 %v669_v42 }
 0x110   :  { %741 = vmatmul.mubr.f32.vlgmr.msra.gmra.mrb[0].mxu1 %v368_v37 }
 0x111   :  { %747 = vmatpush1.xpose.msra.mxu1 %v369_v38  ;;  %810 = vmatprep.mubr.f32.mxu1 %v669_v42 }
 0x112   :  { %816 = vmatprep.subr.mxu1 %v670_v9  ;;  %659 = vmatmul.mubr.f32.vlgmr.msra.gmra.mrb[0].mxu0 %v356_v1 }
 0x118   :  { %811 = vmatmul.mubr.f32.vlgmr.msra.gmra.mrb[0].mxu1 %v369_v38 }
 0x119   :  { %817 = vmatpush1.xpose.msra.mxu1 %v370_v21  ;;  %880 = vmatprep.mubr.f32.mxu1 %v670_v9 }
 0x11a   :  { %886 = vmatprep.subr.mxu1 %v671_v30 }
 0x120   :  { %881 = vmatmul.mubr.f32.vlgmr.msra.gmra.mrb[0].mxu1 %v370_v21 }
 0x121   :  { %887 = vmatpush1.xpose.msra.mxu1 %v371_v29  ;;  %950 = vmatprep.mubr.f32.mxu1 %v671_v30 }
 0x128   :  { %951 = vmatmul.mubr.f32.vlgmr.msra.gmra.mrb[0].mxu1 %v371_v29 }
 0x1e5   :  { %v660_v43 = vpop.f32.mrb[0].mxu0 }
 0x1e6   :  { %v662_v14 = vpop.f32.mrb[1].mxu0 }
 0x1fb   :  { %v952_v45 = vpop.f32.mrb[0].mxu1 }
 0x1fc   :  { %v956_v46 = vmul.f32 %v952_v45, %v660_v43  ;;  %v954_v47 = vpop.f32.mrb[1].mxu1 }
 0x1fe   :  { %v958_v49 = vsel %vm957_vm5, %v956_v46, 0.0 }
 0x1ff   :  { %959 = vadd.xlane.f32.xlu1 %v958_v49 }
 0x28c   :  { %v960_v50 = vpop.xlane.xlu1 %959 }
 0x28d   :  { %v961_v51 = vrot.slane %v960_v50, 4 }
 0x28f   :  { %v962_v52 = vadd.f32 %v961_v51, %v960_v50 }
 0x291   :  { %v963_v53 = vrot.slane %v962_v52, 2 }
 0x293   :  { %v964_v54 = vadd.f32 %v963_v53, %v962_v52 }
 0x295   :  { %v965_v55 = vrot.slane %v964_v54, 1 }
 0x297   :  { %v966_v57 = vadd.f32 %v965_v55, %v964_v54 }
 0x299   :  { %996 = vpush %v966_v57 }
 0x2ca   :  { %s997_s0 = spop %996 }
 0x2cb   :  { %s968_s1 = smul.f32 9.536743e-07, %s997_s0 }
 0x2cd   :  { %970 = sst [smem:[#allocation2]] %s968_s1 }
 0x2ce   :  { %1049 = shalt.err (!%p1046_p2)
}
 0x2cf   :  { %s1053_s4 = smov [#allocation2]  }
 0x2d0   :  { %978 = dma.smem_to_hbm %s1053_s4, 16, %s1227_s2, [#allocation3]  }
 0x2d1   :  { %1050 = dma.done.wait [#allocation3], 16  }
 0x2d2   :  { %1051 = vsyncadd [#allocation3], 4294967280 }
 0x2d3   :  { %982 = sfence }
 0x2d4   :  { %983 = vsyncpa [#allocation3], 1 }

</bundles_post_ra>
